<compile_context>
chip_gen: v7x
topology: tpu7x:2x2x1
jax: 0.10.0
libtpu: 0.0.40
codegen_flags: <defaults>
</compile_context>

<pallas_src>
import math

import jax
import jax.numpy as jnp
from jax.experimental import pallas as pl
from jax.experimental.pallas import tpu as pltpu


def _weighted_sum_kernel(w_ref, x1_ref, x2_ref, o_ref):
    # w_ref is in SMEM: cheap scalar reads, VPU broadcast is free.
    w1 = w_ref[0]
    w2 = w_ref[1]
    # Cast after the load: keeps HBM traffic in the native input dtype; the
    # VALU cast is free (massive slot slack in this mem-bound kernel).
    x1 = x1_ref[...].astype(jnp.float32)
    x2 = x2_ref[...].astype(jnp.float32)
    o_ref[...] = (x1 * w1 + x2 * w2).astype(o_ref.dtype)


_MAX_BLOCK_ROWS = 2048  # diminishing returns past ~1024 rows; bounds compile time
_MIN_BLOCK_ROWS = 8     # sublane granularity


def _round_up(x, m):
    return ((x + m - 1) // m) * m


def _vmem_budget_bytes():
    """VMEM byte budget for the pipeline buffers, with per-generation headroom."""
    try:
        cap = pltpu.get_tpu_info().vmem_capacity_bytes
    except Exception:
        cap = 64 << 20  # conservative (v7x-sized) fallback
    # Keep ~half of physical VMEM as headroom for compiler scratch / metadata.
    return int(min(cap // 2, 48 << 20))


def _pick_lane_width(shape):
    """Choose a lane-dense (multiple-of-128) last dim for the flattened view."""
    total = math.prod(shape) if shape else 1
    last = shape[-1] if shape else 1
    if last % 128 == 0:
        return last
    for w in (1024, 512, 256, 128):
        if total % w == 0:
            return w
    return None  # cannot be made lane dense; caller falls back to one row


def weighted_sum(input1, input2, w1, w2):
    """Elementwise input1 * w1 + input2 * w2 with scalar learnable weights."""
    assert input1.shape == input2.shape, (input1.shape, input2.shape)
    orig_shape = input1.shape
    # Preserve the (promoted) input dtype for the output; the f32 weights only
    # participate in the internal compute.
    out_dtype = jnp.promote_types(input1.dtype, input2.dtype)

    total = math.prod(orig_shape) if orig_shape else 1
    lane_w = _pick_lane_width(orig_shape)
    if lane_w is None:
        # Odd element count: single (masked-store) row; only tiny shapes hit this.
        x1 = input1.reshape(1, total)
        x2 = input2.reshape(1, total)
    else:
        x1 = input1.reshape(-1, lane_w)
        x2 = input2.reshape(-1, lane_w)
    M, N = x1.shape

    in_bytes = x1.dtype.itemsize + x2.dtype.itemsize
    out_bytes = jnp.dtype(out_dtype).itemsize

    # Pack both learnable scalars into one tiny SMEM-resident f32 array.
    w = jnp.stack([jnp.asarray(w1, jnp.float32).reshape(()),
                   jnp.asarray(w2, jnp.float32).reshape(())])

    smem_spec = pl.BlockSpec(memory_space=pltpu.MemorySpace.SMEM)

    budget = _vmem_budget_bytes()
    # Double-buffered footprint per block row: 2 buffers x (in1 + in2 + out).
    row_bytes = 2 * N * (in_bytes + out_bytes)
    block_rows = max(
        _MIN_BLOCK_ROWS,
        min(_MAX_BLOCK_ROWS, (budget // max(row_bytes, 1)) // 8 * 8),
    )
    vmem_limit = int(min(budget + (16 << 20), 128 << 20))

    cost = pl.CostEstimate(flops=3 * total, transcendentals=0,
                           bytes_accessed=total * (in_bytes + out_bytes))

    if M <= block_rows or lane_w is None:
        # Whole problem fits one VMEM block: gridless (a grid is a serial loop
        # on TPU; each step costs ~0.35 us of pure dispatch/DMA-setup overhead).
        # TODO(synk): at ServeNet's actual (2, 1024) size this op is dispatch
        # bound; in production let XLA fuse it into a neighbouring kernel.
        grid = ()
        vec_spec = pl.BlockSpec((M, N), lambda: (0, 0))
        compiler_params = pltpu.CompilerParams(vmem_limit_bytes=vmem_limit)
    else:
        # Tiled path: balance the tiles (v7x has 2 TensorCores; "parallel"
        # only pays off if both get comparable work) while keeping them as big
        # as the per-generation VMEM budget allows.
        num_tiles = pl.cdiv(M, block_rows)
        if num_tiles > 1 and num_tiles % 2 == 1:
            num_tiles += 1
        block_rows = _round_up(pl.cdiv(M, num_tiles), _MIN_BLOCK_ROWS)
        grid = (pl.cdiv(M, block_rows),)
        vec_spec = pl.BlockSpec((block_rows, N), lambda i: (i, 0))
        compiler_params = pltpu.CompilerParams(
            dimension_semantics=("parallel",),
            vmem_limit_bytes=vmem_limit,
        )

    out = pl.pallas_call(
        _weighted_sum_kernel,
        grid=grid,
        out_shape=jax.ShapeDtypeStruct((M, N), out_dtype),
        in_specs=[smem_spec, vec_spec, vec_spec],
        out_specs=vec_spec,
        compiler_params=compiler_params,
        cost_estimate=cost,
    )(w, x1, x2)
    return out.reshape(orig_shape)


if __name__ == "__main__":
    key = jax.random.PRNGKey(0)
    k1, k2, k3, k4, k5, k6, k7, k8 = jax.random.split(key, 8)

    # Shapes as used in ServeNet-LT: input1 = name features (B, 1024),
    # input2 = BiLSTM hidden-state concat (B, 1024).
    B, D = 2, 1024
    input1 = jax.random.normal(k1, (B, D), jnp.float32)
    input2 = jax.random.normal(k2, (B, D), jnp.float32)
    w1 = jax.random.normal(k3, (1,), jnp.float32)
    w2 = jax.random.normal(k4, (1,), jnp.float32)

    out = jax.block_until_ready(weighted_sum(input1, input2, w1, w2))
    ref = input1 * w1 + input2 * w2
    assert out.shape == ref.shape and out.dtype == ref.dtype
    assert jnp.allclose(out, ref, atol=1e-6, rtol=1e-6), float(
        jnp.max(jnp.abs(out - ref)))

    # bf16 inputs with a non-128-aligned last dim: exercises the in-kernel cast,
    # the promoted-output-dtype path, and the lane-width fallback.
    a16 = jax.random.normal(k5, (3, 200), jnp.float32).astype(jnp.bfloat16)
    b16 = jax.random.normal(k6, (3, 200), jnp.float32).astype(jnp.bfloat16)
    out16 = jax.block_until_ready(weighted_sum(a16, b16, w1, w2))
    ref16 = (a16.astype(jnp.float32) * w1 + b16.astype(jnp.float32) * w2
             ).astype(jnp.bfloat16)
    assert out16.dtype == jnp.bfloat16 and out16.shape == ref16.shape
    assert jnp.allclose(out16.astype(jnp.float32), ref16.astype(jnp.float32),
                        atol=2e-2, rtol=2e-2)

    # Larger operand: exercises the VMEM-budgeted, balanced, row-tiled
    # "parallel"-grid path.
    M_big = 4096
    big1 = jax.random.normal(k7, (M_big, D), jnp.float32)
    big2 = jax.random.normal(k8, (M_big, D), jnp.float32)
    out_big = jax.block_until_ready(weighted_sum(big1, big2, w1, w2))
    ref_big = big1 * w1 + big2 * w2
    assert jnp.allclose(out_big, ref_big, atol=1e-6, rtol=1e-6)

    print("KERNEL_OK")
</pallas_src>

<mosaic_0001>
module attributes {stable_mosaic.version = 11 : i64} {
  func.func @_weighted_sum_kernel(%arg0: memref<2xf32, #tpu.memory_space<smem>>, %arg1: memref<2x1024xf32, #tpu.memory_space<vmem>>, %arg2: memref<2x1024xf32, #tpu.memory_space<vmem>>, %arg3: memref<2x1024xf32, #tpu.memory_space<vmem>>) attributes {dimension_semantics = [], scalar_prefetch = 0 : i64, scratch_operands = 0 : i64, tpu.core_type = #tpu.core_type<tc>} {
    %c0 = arith.constant 0 : index
    %0 = memref.load %arg0[%c0] : memref<2xf32, #tpu.memory_space<smem>>
    %c1 = arith.constant 1 : index
    %1 = memref.load %arg0[%c1] : memref<2xf32, #tpu.memory_space<smem>>
    %c0_0 = arith.constant 0 : index
    %c0_1 = arith.constant 0 : index
    %2 = vector.load %arg1[%c0_0, %c0_1] : memref<2x1024xf32, #tpu.memory_space<vmem>>, vector<2x1024xf32>
    %c0_2 = arith.constant 0 : index
    %c0_3 = arith.constant 0 : index
    %3 = vector.load %arg2[%c0_2, %c0_3] : memref<2x1024xf32, #tpu.memory_space<vmem>>, vector<2x1024xf32>
    %4 = vector.broadcast %0 : f32 to vector<2x1024xf32>
    %5 = arith.mulf %2, %4 : vector<2x1024xf32>
    %6 = vector.broadcast %1 : f32 to vector<2x1024xf32>
    %7 = arith.mulf %3, %6 : vector<2x1024xf32>
    %8 = arith.addf %5, %7 : vector<2x1024xf32>
    %c0_4 = arith.constant 0 : index
    %c0_5 = arith.constant 0 : index
    %9 = vector.load %arg3[%c0_4, %c0_5] : memref<2x1024xf32, #tpu.memory_space<vmem>>, vector<2x1024xf32>
    tpu.vector_store %arg3[%c0_4, %c0_5], %8 {strides = array<i32>} : memref<2x1024xf32, #tpu.memory_space<vmem>>, vector<2x1024xf32>,
    return
  }
}

</mosaic_0001>

<bundles_post_ra>
// kernel: tpu_custom_call.1
= control target key start
LH: loop header
LB: loop body
LE: loop exit
PB: predicated region body
PF: predicated region fallthrough
CT: control target
= control target key end

     0   :  { %8 = vsyncpa [#allocation5], 0  ;;  %s244_s0 = inlined_call_operand.hbm [shape: f32[2], index: 0, kind: input, shape index: {}]   ;;  %s245_s1 = inlined_call_operand.hbm [shape: f32[2,1024], index: 1, kind: input, shape index: {}]   ;;  %s246_s2 = inlined_call_operand.hbm [shape: f32[2,1024], index: 2, kind: input, shape index: {}]   ;;  %s247_s3 = inlined_call_operand.hbm [shape: f32[2,1024], index: 3, kind: output, shape index: {}]  }
   0x1   :  { %9 = vsyncpa [#allocation3], 0 }
   0x2   :  { %10 = vsyncpa [#allocation8], 0 }
   0x3   :  { %11 = vsyncpa [#allocation4], 0  ;;  %s88_s14 = scalar_lea.hbm %s244_s0, 16 }
   0x4   :  { %p89_p0 = scmp.ne.s32.totalorder %s244_s0, %s88_s14  ;;  %p92_p1 = scmp.lt.u32.totalorder %s88_s14, %s244_s0 }
   0x6   :  { %p94_p2 = pnand %p92_p1, %p89_p0 }
   0x8   :  { %97 = shalt.err (!%p94_p2)
}
   0x9   :  { %s172_s19 = smov [#allocation2]   ;;  %s173_s22 = smov [#allocation6]  }
   0xa   :  { %19 = dma.hbm_to_smem %s244_s0, 16, %s172_s19, [#allocation5]  }
   0xb   :  { %s26_s23 = sshll.u32 %s173_s22, 4  ;;  %s174_s24 = smov [#allocation7]   ;;  %s27_s23 = int_to_ptr.vmem [resolvable:$true] %s26_s23 }
   0xc   :  { %s36_s25 = sshll.u32 %s174_s24, 4  ;;  %s98_s28 = scalar_lea.hbm %s245_s1, 256  ;;  %s37_s25 = int_to_ptr.vmem [resolvable:$true] %s36_s25 }
   0xd   :  { %p99_p3 = scmp.ne.s32.totalorder %s245_s1, %s98_s28  ;;  %p102_p4 = scmp.lt.u32.totalorder %s98_s28, %s245_s1 }
   0xf   :  { %p104_p5 = pnand %p102_p4, %p99_p3 }
  0x11   :  { %107 = shalt.err (!%p104_p5)
}
  0x12   :  { %s108_s0 = scalar_lea.vmem %s27_s23, 256  ;;  %p113_p7 = scmp.lt.s32.totalorder %s27_s23, %s27_s23 }
  0x13   :  { %p109_p6 = scmp.ne.s32.totalorder %s27_s23, %s108_s0  ;;  %p114_p8 = scmp.lt.s32.totalorder %s108_s0, %s108_s0 }
  0x15   :  { %p115_p9 = por %p114_p8, %p113_p7 }
  0x17   :  { %p116_p10 = pnand %p115_p9, %p109_p6 }
  0x19   :  { %119 = shalt.err (!%p116_p10)
}
  0x1a   :  { %29 = dma.hbm_to_vmem [thread:$0]  %s245_s1, 256, %s27_s23, [#allocation3]  }
  0x1b   :  { %s120_s10 = scalar_lea.hbm %s246_s2, 256 }
  0x1c   :  { %p121_p11 = scmp.ne.s32.totalorder %s246_s2, %s120_s10  ;;  %p124_p12 = scmp.lt.u32.totalorder %s120_s10, %s246_s2 }
  0x1e   :  { %p126_p13 = pnand %p124_p12, %p121_p11 }
  0x20   :  { %129 = shalt.err (!%p126_p13)
}
  0x21   :  { %s130_s15 = scalar_lea.vmem %s37_s25, 256  ;;  %p135_p1 = scmp.lt.s32.totalorder %s37_s25, %s37_s25 }
  0x22   :  { %p131_p0 = scmp.ne.s32.totalorder %s37_s25, %s130_s15  ;;  %p136_p2 = scmp.lt.s32.totalorder %s130_s15, %s130_s15 }
  0x24   :  { %p137_p3 = por %p136_p2, %p135_p1 }
  0x26   :  { %p138_p4 = pnand %p137_p3, %p131_p0 }
  0x28   :  { %141 = shalt.err (!%p138_p4)
}
  0x29   :  { %39 = dma.hbm_to_vmem [thread:$0]  %s246_s2, 256, %s37_s25, [#allocation8]  }
  0x2a   :  { %164 = dma.done.wait [#allocation5], 16  }
  0x2b   :  { %165 = vsyncadd [#allocation5], 4294967280 }
  0x2c   :  { %166 = dma.done.wait [#allocation3], 256  }
  0x2d   :  { %167 = vsyncadd [#allocation3], 4294967040 }
  0x2e   :  { %168 = dma.done.wait [#allocation8], 256  }
  0x2f   :  { %169 = vsyncadd [#allocation8], 4294967040 }
  0x30   :  { %49 = sfence }
  0x31   :  { %s50_s17 = sld [smem:[#allocation2]]  ;;  %s83_s18 = sld [smem:[#allocation2 + $0x1]]  ;;  %v52_v0 = vld [vmem:[#allocation6] sm:$0xff]  ;;  %v54_v1 = vld [vmem:[#allocation7] sm:$0xff]  ;;  %v53_v2 = vld [vmem:[#allocation6 + $0x8] sm:$0xff] }
  0x32   :  { %v55_v3 = vld [vmem:[#allocation7 + $0x8] sm:$0xff]  ;;  %s175_s19 = smov [#allocation9]  }
  0x33   :  { %s72_s20 = sshll.u32 %s175_s19, 4  ;;  %s73_s20 = int_to_ptr.vmem [resolvable:$true] %s72_s20 }
  0x34   :  { %s142_s2 = scalar_lea.vmem %s73_s20, 256  ;;  %p147_p6 = scmp.lt.s32.totalorder %s73_s20, %s73_s20 }
  0x35   :  { %p143_p5 = scmp.ne.s32.totalorder %s73_s20, %s142_s2  ;;  %p148_p7 = scmp.lt.s32.totalorder %s142_s2, %s142_s2 }
  0x37   :  { %v56_v4 = vstv %s50_s17  ;;  %v59_v5 = vstv %s83_s18  ;;  %p149_p8 = por %p148_p7, %p147_p6 }
  0x38   :  { %v57_v6 = vmul.f32 %v56_v4, %v52_v0  ;;  %v60_v7 = vmul.f32 %v59_v5, %v54_v1  ;;  %v58_v8 = vmul.f32 %v56_v4, %v53_v2  ;;  %v61_v9 = vmul.f32 %v59_v5, %v55_v3 }
  0x39   :  { %p150_p9 = pnand %p149_p8, %p143_p5 }
  0x3a   :  { %v62_v10 = vadd.f32 %v60_v7, %v57_v6  ;;  %v63_v11 = vadd.f32 %v61_v9, %v58_v8 }
  0x3c   :  { %64 = vst [vmem:[#allocation9] sm:$0xff] %v62_v10  ;;  %65 = vst [vmem:[#allocation9 + $0x8] sm:$0xff] %v63_v11 }
  0x3d   :  { %153 = shalt.err (!%p150_p9)
}
  0x3e   :  { %s154_s23 = scalar_lea.hbm %s247_s3, 256 }
  0x3f   :  { %p155_p10 = scmp.ne.s32.totalorder %s247_s3, %s154_s23  ;;  %p158_p11 = scmp.lt.u32.totalorder %s154_s23, %s247_s3 }
  0x41   :  { %p160_p12 = pnand %p158_p11, %p155_p10 }
  0x43   :  { %163 = shalt.err (!%p160_p12)
}
  0x44   :  { %75 = dma.vmem_to_hbm [thread:$0]  %s73_s20, 256, %s247_s3, [#allocation4]  }
  0x45   :  { %170 = dma.done.wait [#allocation4], 256  }
  0x46   :  { %171 = vsyncadd [#allocation4], 4294967040 }
  0x47   :  { %79 = vsyncpa [#allocation3], 1 }
  0x48   :  { %80 = vsyncpa [#allocation8], 1 }
  0x49   :  { %81 = vsyncpa [#allocation4], 1 }
  0x4a   :  { %82 = vsyncpa [#allocation5], 1 }

</bundles_post_ra>
